<compile_context>
chip_gen: v7x
topology: tpu7x:2x2x1
jax: 0.10.0
libtpu: 0.0.40
codegen_flags: <defaults>
</compile_context>

<pallas_src>
import functools

import jax
import jax.numpy as jnp
from jax import lax
from jax.experimental import pallas as pl
from jax.experimental.pallas import tpu as pltpu

_LANES = 128


def _round8(r):
    return (r + 7) // 8 * 8


# ---------------------------------------------------------------------------
# Fused Pallas kernel
# ---------------------------------------------------------------------------
def _encoder_kernel(x_ref, p_ref, out_ref, *, n, cfgs, head, matmul_dtype):
    """Fused CNN encoder forward (all conv blocks + fused mu||log_var head).

    x_ref   : (N, L0, C0)     input, channels-last
    p_ref   : (R, 128)        packed weights / biases (static row offsets)
    out_ref : (N*L_enc, 128)  lane-dense fused head output (cols >= 2C are 0)
    """
    a3 = x_ref[...]                                   # (N, L, C) activation
    a2 = None                                         # (N*L, C) folded view
    for cfg in cfgs:
        ks, stride, pad = cfg["k"], cfg["s"], cfg["p"]
        l_out = cfg["l_out"]
        c_in, c_out = cfg["c_in"], cfg["c_out"]

        # Zero halo built in registers (no VMEM scratch round trip).
        if pad > 0:
            halo = jnp.zeros((n, pad, c_in), a3.dtype)
            a_pad = jnp.concatenate([halo, a3, halo], axis=1)
        else:
            a_pad = a3

        # im2col: the K shifted tap slices concatenated along lanes.
        if stride == 1:
            taps = [a_pad[:, t:t + l_out, :] for t in range(ks)]
        else:
            # TODO(synk): stride>1 tap reads (strided sublane slices) are not
            # exercised by this config; validate vs. the reference first.
            taps = [a_pad[:, t:t + (l_out - 1) * stride + 1:stride, :]
                    for t in range(ks)]
        cols = taps[0] if ks == 1 else jnp.concatenate(taps, axis=-1)

        # Fold N into the matmul M axis -> one MXU matmul per layer.
        cols2 = cols.reshape(n * l_out, ks * c_in)
        w = p_ref[cfg["w_off"]:cfg["w_off"] + ks * c_in, :c_out]
        b = p_ref[cfg["b_off"]:cfg["b_off"] + 1, :c_out]
        acc = jnp.dot(cols2.astype(matmul_dtype), w.astype(matmul_dtype),
                      preferred_element_type=jnp.float32)
        a2 = jnp.maximum(acc + b, 0.0)                # conv + bias + ReLU
        a3 = a2.reshape(n, l_out, c_out)
        # TODO(synk): optional nn.MaxPool1d branch (max_pool_k_size) not implemented.

    # Fused mu / log_var 1x1 heads: one (C, 128) matmul, unmasked 128-lane store.
    wh = p_ref[head["w_off"]:head["w_off"] + head["c"], :]   # (C, 128), cols>=2C zero
    bh = p_ref[head["b_off"]:head["b_off"] + 1, :]           # (1, 128)
    h = jnp.dot(a2.astype(matmul_dtype), wh.astype(matmul_dtype),
                preferred_element_type=jnp.float32) + bh
    out_ref[...] = h.astype(out_ref.dtype)


# ---------------------------------------------------------------------------
# Wrapper (single pallas_call, no grid, 2 inputs, all plumbing static Python)
# ---------------------------------------------------------------------------
def _pad_piece(a2d):
    """Pad a 2D param piece to (round8(rows), 128) so every packed piece
    starts at an 8-aligned row offset and 128-lane column offset 0."""
    r, c = a2d.shape
    return jnp.pad(a2d, ((0, _round8(r) - r), (0, _LANES - c)))


def cnn_encoder_forward(x_ncl, params, kernel_sizes, strides, paddings,
                        matmul_dtype=jnp.float32):
    """Full forward pass. x_ncl is PyTorch-style (N, C_in, L).

    Returns (mu, log_var) in PyTorch-style (N, C_out, L_enc).
    Set matmul_dtype=jnp.bfloat16 on v6e/v7x for scaled-up sizes (loosens
    accuracy below the 1e-5 f32 check used here).
    """
    assert len(kernel_sizes) == len(strides) == len(paddings) >= 1
    n, c0, l0 = x_ncl.shape
    x_nlc = jnp.transpose(x_ncl, (0, 2, 1))          # NCL -> NLC (C on lanes)

    # ---- pack every weight / bias into ONE (R, 128) f32 slab -> 2 DMAs total.
    pieces = []
    cur = 0

    def _add(a2d):
        nonlocal cur
        p = _pad_piece(jnp.asarray(a2d, jnp.float32))
        pieces.append(p)
        off = cur
        cur += p.shape[0]
        return off

    cfgs = []
    l_cur, c_cur = l0, c0
    for (w_kio, b), k, s, p in zip(params["layers"], kernel_sizes, strides,
                                   paddings):
        c_out = w_kio.shape[-1]
        assert c_out <= _LANES
        l_out = (l_cur + 2 * p - k) // s + 1
        w_off = _add(w_kio.reshape(k * c_cur, c_out))   # im2col-folded weight
        b_off = _add(b)
        cfgs.append(dict(k=k, s=s, p=p, l_in=l_cur, l_out=l_out,
                         c_in=c_cur, c_out=c_out, w_off=w_off, b_off=b_off))
        l_cur, c_cur = l_out, c_out

    # Fused heads: concat mu||var along the output axis; _pad_piece zero-pads
    # the remaining lanes to 128 so the kernel's output store is unmasked.
    assert 2 * c_cur <= _LANES
    wh = jnp.concatenate([params["mu_w"], params["var_w"]], axis=-1)   # (C, 2C)
    bh = jnp.concatenate([params["mu_b"], params["var_b"]], axis=-1)   # (1, 2C)
    head = dict(c=c_cur, w_off=_add(wh), b_off=_add(bh))
    packed = jnp.concatenate(pieces, axis=0)                           # (R, 128)

    kernel = functools.partial(_encoder_kernel, n=n, cfgs=tuple(cfgs),
                               head=head, matmul_dtype=matmul_dtype)
    out = pl.pallas_call(
        kernel,
        out_shape=jax.ShapeDtypeStruct((n * l_cur, _LANES), jnp.float32),
        # No grid: single invocation, whole operands resident in VMEM
        # (no pipeline double-buffering or per-step overhead for one step).
        # A "parallel" batch grid axis only becomes worthwhile on v7x (2 TCs)
        # once N*L grows well past MXU width; at this size it is pure overhead.
        in_specs=[pl.BlockSpec(memory_space=pltpu.MemorySpace.VMEM),
                  pl.BlockSpec(memory_space=pltpu.MemorySpace.VMEM)],
        out_specs=pl.BlockSpec(memory_space=pltpu.MemorySpace.VMEM),
    )(x_nlc, packed)

    h = out[:, :2 * c_cur].reshape(n, l_cur, 2 * c_cur)
    mu = jnp.transpose(h[..., :c_cur], (0, 2, 1))        # back to NCL
    log_var = jnp.transpose(h[..., c_cur:], (0, 2, 1))
    return mu, log_var


# ---------------------------------------------------------------------------
# Deterministic parameter construction (matches nn.Conv1d shapes)
# ---------------------------------------------------------------------------
def init_params(key, inp_channels, out_channels, kernel_sizes):
    params = {"layers": []}
    c_in = inp_channels
    for ksize in kernel_sizes:
        key, kw, kb = jax.random.split(key, 3)
        bound = 1.0 / jnp.sqrt(c_in * ksize)
        # stored as (K, C_in, C_out) == transpose of PyTorch (C_out, C_in, K)
        w = jax.random.uniform(kw, (ksize, c_in, out_channels), jnp.float32,
                               -bound, bound)
        b = jax.random.uniform(kb, (1, out_channels), jnp.float32, -bound, bound)
        params["layers"].append((w, b))
        c_in = out_channels
    bound = 1.0 / jnp.sqrt(out_channels * 1)
    key, k1, k2, k3, k4 = jax.random.split(key, 5)
    # 1x1 conv weights stored as (C_in, C_out)
    params["mu_w"] = jax.random.uniform(k1, (out_channels, out_channels),
                                        jnp.float32, -bound, bound)
    params["mu_b"] = jax.random.uniform(k2, (1, out_channels), jnp.float32,
                                        -bound, bound)
    params["var_w"] = jax.random.uniform(k3, (out_channels, out_channels),
                                         jnp.float32, -bound, bound)
    params["var_b"] = jax.random.uniform(k4, (1, out_channels), jnp.float32,
                                         -bound, bound)
    return params


# ---------------------------------------------------------------------------
# Pure-JAX reference (for correctness check)
# ---------------------------------------------------------------------------
def reference_forward(x_ncl, params, kernel_sizes, strides, paddings):
    x = x_ncl
    for (w_kio, b), k, s, p in zip(params["layers"], kernel_sizes, strides,
                                   paddings):
        w_oik = jnp.transpose(w_kio, (2, 1, 0))  # (C_out, C_in, K)
        x = lax.conv_general_dilated(x, w_oik, (s,), [(p, p)],
                                     dimension_numbers=("NCH", "OIH", "NCH"))
        x = x + b[0][None, :, None]
        x = jnp.maximum(x, 0.0)
    mu = jnp.einsum("ncl,co->nol", x, params["mu_w"]) + params["mu_b"][0][None, :, None]
    lv = jnp.einsum("ncl,co->nol", x, params["var_w"]) + params["var_b"][0][None, :, None]
    return mu, lv


# ---------------------------------------------------------------------------
if __name__ == "__main__":
    # Module config: inp_nb_channels=4, out_nb_channels=32,
    # kernel_sizes=[3,3], strides=[1,1], padding=[1,1], no max-pool.
    N, C_IN, L = 2, 4, 16
    C_OUT = 32
    KERNEL_SIZES = [3, 3]
    STRIDES = [1, 1]
    PADDINGS = [1, 1]

    key = jax.random.PRNGKey(0)
    key, kx = jax.random.split(key)
    x = jax.random.normal(kx, (N, C_IN, L), jnp.float32)  # PyTorch NCL input

    params = init_params(key, C_IN, C_OUT, KERNEL_SIZES)

    mu, log_var = cnn_encoder_forward(x, params, KERNEL_SIZES, STRIDES, PADDINGS)
    mu = jax.block_until_ready(mu)
    log_var = jax.block_until_ready(log_var)

    assert mu.shape == log_var.shape == (N, C_OUT, L), (mu.shape, log_var.shape)

    mu_ref, lv_ref = reference_forward(x, params, KERNEL_SIZES, STRIDES, PADDINGS)
    assert jnp.allclose(mu, mu_ref, atol=1e-5, rtol=1e-5)
    assert jnp.allclose(log_var, lv_ref, atol=1e-5, rtol=1e-5)

    print("KERNEL_OK")
</pallas_src>

<mosaic_0001>
module attributes {stable_mosaic.version = 11 : i64} {
  func.func @_encoder_kernel(%arg0: memref<2x16x4xf32, #tpu.memory_space<vmem>>, %arg1: memref<168x128xf32, #tpu.memory_space<vmem>>, %arg2: memref<32x128xf32, #tpu.memory_space<vmem>>) attributes {dimension_semantics = [], scalar_prefetch = 0 : i64, scratch_operands = 0 : i64, tpu.core_type = #tpu.core_type<tc>} {
    %c0 = arith.constant 0 : index
    %c0_0 = arith.constant 0 : index
    %c0_1 = arith.constant 0 : index
    %0 = vector.load %arg0[%c0, %c0_0, %c0_1] : memref<2x16x4xf32, #tpu.memory_space<vmem>>, vector<2x16x4xf32>
    %cst = arith.constant 0.000000e+00 : f32
    %1 = vector.broadcast %cst : f32 to vector<2x1x4xf32>
    %2 = tpu.concatenate %1, %0, %1 in 1 : vector<2x1x4xf32>, vector<2x16x4xf32>, vector<2x1x4xf32> -> vector<2x18x4xf32>
    %3 = vector.extract_strided_slice %2 {offsets = [0, 0, 0], sizes = [2, 16, 4], strides = [1, 1, 1]} : vector<2x18x4xf32> to vector<2x16x4xf32>
    %4 = vector.extract_strided_slice %2 {offsets = [0, 1, 0], sizes = [2, 16, 4], strides = [1, 1, 1]} : vector<2x18x4xf32> to vector<2x16x4xf32>
    %5 = vector.extract_strided_slice %2 {offsets = [0, 2, 0], sizes = [2, 16, 4], strides = [1, 1, 1]} : vector<2x18x4xf32> to vector<2x16x4xf32>
    %6 = tpu.concatenate %3, %4, %5 in 2 : vector<2x16x4xf32>, vector<2x16x4xf32>, vector<2x16x4xf32> -> vector<2x16x12xf32>
    %7 = vector.shape_cast %6 : vector<2x16x12xf32> to vector<32x12xf32>
    %c0_2 = arith.constant 0 : index
    %c0_3 = arith.constant 0 : index
    %8 = vector.load %arg1[%c0_2, %c0_3] : memref<168x128xf32, #tpu.memory_space<vmem>>, vector<12x32xf32>
    %c16 = arith.constant 16 : index
    %c0_4 = arith.constant 0 : index
    %9 = vector.load %arg1[%c16, %c0_4] : memref<168x128xf32, #tpu.memory_space<vmem>>, vector<1x32xf32>
    %cst_5 = arith.constant dense<0.000000e+00> : vector<32x32xf32>
    %10 = tpu.matmul %7, %8, %cst_5 {dimension_numbers = #tpu.dot_dimension_numbers<[1], [0], [0], [1], [0, 0, 1, 1], [], []>} : vector<32x12xf32>, vector<12x32xf32>, vector<32x32xf32> -> vector<32x32xf32>
    %11 = vector.broadcast %9 : vector<1x32xf32> to vector<32x32xf32>
    %12 = arith.addf %10, %11 : vector<32x32xf32>
    %cst_6 = arith.constant 0.000000e+00 : f32
    %13 = vector.broadcast %cst_6 : f32 to vector<32x32xf32>
    %14 = arith.maximumf %12, %13 : vector<32x32xf32>
    %15 = vector.shape_cast %14 : vector<32x32xf32> to vector<2x16x32xf32>
    %cst_7 = arith.constant 0.000000e+00 : f32
    %16 = vector.broadcast %cst_7 : f32 to vector<2x1x32xf32>
    %17 = tpu.concatenate %16, %15, %16 in 1 : vector<2x1x32xf32>, vector<2x16x32xf32>, vector<2x1x32xf32> -> vector<2x18x32xf32>
    %18 = vector.extract_strided_slice %17 {offsets = [0, 0, 0], sizes = [2, 16, 32], strides = [1, 1, 1]} : vector<2x18x32xf32> to vector<2x16x32xf32>
    %19 = vector.extract_strided_slice %17 {offsets = [0, 1, 0], sizes = [2, 16, 32], strides = [1, 1, 1]} : vector<2x18x32xf32> to vector<2x16x32xf32>
    %20 = vector.extract_strided_slice %17 {offsets = [0, 2, 0], sizes = [2, 16, 32], strides = [1, 1, 1]} : vector<2x18x32xf32> to vector<2x16x32xf32>
    %21 = tpu.concatenate %18, %19, %20 in 2 : vector<2x16x32xf32>, vector<2x16x32xf32>, vector<2x16x32xf32> -> vector<2x16x96xf32>
    %22 = vector.shape_cast %21 : vector<2x16x96xf32> to vector<32x96xf32>
    %c24 = arith.constant 24 : index
    %c0_8 = arith.constant 0 : index
    %23 = vector.load %arg1[%c24, %c0_8] : memref<168x128xf32, #tpu.memory_space<vmem>>, vector<96x32xf32>
    %c120 = arith.constant 120 : index
    %c0_9 = arith.constant 0 : index
    %24 = vector.load %arg1[%c120, %c0_9] : memref<168x128xf32, #tpu.memory_space<vmem>>, vector<1x32xf32>
    %cst_10 = arith.constant dense<0.000000e+00> : vector<32x32xf32>
    %25 = tpu.matmul %22, %23, %cst_10 {dimension_numbers = #tpu.dot_dimension_numbers<[1], [0], [0], [1], [0, 0, 1, 1], [], []>} : vector<32x96xf32>, vector<96x32xf32>, vector<32x32xf32> -> vector<32x32xf32>
    %26 = vector.broadcast %24 : vector<1x32xf32> to vector<32x32xf32>
    %27 = arith.addf %25, %26 : vector<32x32xf32>
    %cst_11 = arith.constant 0.000000e+00 : f32
    %28 = vector.broadcast %cst_11 : f32 to vector<32x32xf32>
    %29 = arith.maximumf %27, %28 : vector<32x32xf32>
    %c128 = arith.constant 128 : index
    %c0_12 = arith.constant 0 : index
    %30 = vector.load %arg1[%c128, %c0_12] : memref<168x128xf32, #tpu.memory_space<vmem>>, vector<32x128xf32>
    %c160 = arith.constant 160 : index
    %c0_13 = arith.constant 0 : index
    %31 = vector.load %arg1[%c160, %c0_13] : memref<168x128xf32, #tpu.memory_space<vmem>>, vector<1x128xf32>
    %cst_14 = arith.constant dense<0.000000e+00> : vector<32x128xf32>
    %32 = tpu.matmul %29, %30, %cst_14 {dimension_numbers = #tpu.dot_dimension_numbers<[1], [0], [0], [1], [0, 0, 1, 1], [], []>} : vector<32x32xf32>, vector<32x128xf32>, vector<32x128xf32> -> vector<32x128xf32>
    %33 = vector.broadcast %31 : vector<1x128xf32> to vector<32x128xf32>
    %34 = arith.addf %32, %33 : vector<32x128xf32>
    %c0_15 = arith.constant 0 : index
    %c0_16 = arith.constant 0 : index
    %35 = vector.load %arg2[%c0_15, %c0_16] : memref<32x128xf32, #tpu.memory_space<vmem>>, vector<32x128xf32>
    tpu.vector_store %arg2[%c0_15, %c0_16], %34 {strides = array<i32>} : memref<32x128xf32, #tpu.memory_space<vmem>>, vector<32x128xf32>,
    return
  }
}

</mosaic_0001>

<bundles_post_ra>
// kernel: tpu_custom_call.1
= control target key start
LH: loop header
LB: loop body
LE: loop exit
PB: predicated region body
PF: predicated region fallthrough
CT: control target
= control target key end

     0   :  { %7 = vsyncpa [#allocation3], 0  ;;  %s868_s0 = inlined_call_operand.vmem [shape: f32[2,16,4], index: 0, kind: input, shape index: {}]   ;;  %s869_s1 = inlined_call_operand.hbm [shape: f32[168,128], index: 1, kind: input, shape index: {}]   ;;  %s870_s2 = inlined_call_operand.hbm [shape: f32[32,128], index: 2, kind: output, shape index: {}]  }
   0x1   :  { %8 = vsyncpa [#allocation4], 0  ;;  %s742_s9 = smov [#allocation2]   ;;  %s694_s13 = scalar_lea.hbm %s869_s1, 2688 }
   0x2   :  { %s16_s10 = sshll.u32 %s742_s9, 4  ;;  %p695_p0 = scmp.ne.s32.totalorder %s869_s1, %s694_s13  ;;  %s17_s10 = int_to_ptr.vmem [resolvable:$true] %s16_s10 }
   0x3   :  { %p698_p1 = scmp.lt.u32.totalorder %s694_s13, %s869_s1 }
   0x5   :  { %p700_p2 = pnand %p698_p1, %p695_p0 }
   0x7   :  { %703 = shalt.err (!%p700_p2)
}
   0x8   :  { %s704_s18 = scalar_lea.vmem %s17_s10, 2688  ;;  %p709_p4 = scmp.lt.s32.totalorder %s17_s10, %s17_s10 }
   0x9   :  { %p705_p3 = scmp.ne.s32.totalorder %s17_s10, %s704_s18  ;;  %p710_p5 = scmp.lt.s32.totalorder %s704_s18, %s704_s18 }
   0xb   :  { %p711_p6 = por %p710_p5, %p709_p4 }
   0xd   :  { %p712_p7 = pnand %p711_p6, %p705_p3 }
   0xf   :  { %715 = shalt.err (!%p712_p7)
}
  0x10   :  { %s743_s19 = smov 128   ;;  %s744_s20 = smov 8  }
  0x11   :  { %22 = dma.hbm_to_vmem [thread:$0]  %s869_s1, 2688, %s17_s10, [#allocation3], %s743_s19, %s743_s19, %s744_s20  }
  0x12   :  { %738 = dma.done.wait [#allocation3], 2688  }
  0x13   :  { %739 = vsyncadd [#allocation3], 4294964608  ;;  %v26_v0 = vld [vmem:[%s868_s0] sm:$0xff]  ;;  %v27_v1 = vld [vmem:[%s868_s0 + $0x8] sm:$0xff]  ;;  %vm34_vm0 = vcmask 1040384   ;;  %vm78_vm1 = vcmask 1045504  }
  0x14   :  { %v28_v2 = vld [vmem:[%s868_s0 + $0x10] sm:$0xff]  ;;  %v35_v3 = vrot.slane %v26_v0, 7  ;;  %v36_v4 = vrot.slane %v27_v1, 7  ;;  %v29_v5 = vld [vmem:[%s868_s0 + $0x18] sm:$0xff]  ;;  %vm55_vm2 = vcmask 1046528   ;;  %vm131_vm3 = vcmask 1043456  }
  0x15   :  { %v38_v6 = vrot.slane %v28_v2, 7  ;;  %v39_v7 = vrot.slane %v29_v5, 7  ;;  %v111_v20 = vld [vmem:[#allocation2] sm:$0xff]  ;;  %v112_v21 = vld [vmem:[#allocation2 + $0x8] sm:$0xf]  ;;  %s745_s0 = smov 4  }
  0x16   :  { %v37_v8 = vsel %vm34_vm0, %v35_v3, %v36_v4  ;;  %v47_v9 = vsel %vm34_vm0, 0.0, %v35_v3  ;;  %v49_v10 = vsel %vm34_vm0, %v36_v4, 0.0  ;;  %vm746_vm4 = vmmov 1   ;;  %v302_v53 = vld [vmem:[#allocation2 + $0x18] sm:$0xff]  ;;  %v303_v54 = vld [vmem:[#allocation2 + $0x20] sm:$0xff]  ;;  %v304_v55 = vld [vmem:[#allocation2 + $0x28] sm:$0xff] }
  0x17   :  { %v48_v11 = vsel %vm34_vm0, 0.0, %v38_v6  ;;  %v79_v12 = vrot.slane %v47_v9, 2  ;;  %v80_v13 = vrot.slane %v37_v8, 2  ;;  %v56_v14 = vrot.slane %v47_v9, 1  ;;  %vm649_vm5 = vmpackc.low %vm131_vm3, %vm746_vm4  ;;  %v305_v57 = vld [vmem:[#allocation2 + $0x30] sm:$0xff]  ;;  %v306_v59 = vld [vmem:[#allocation2 + $0x38] sm:$0xff] }
  0x18   :  { %v57_v15 = vrot.slane %v37_v8, 1  ;;  %v82_v16 = vrot.slane %v49_v10, 2  ;;  %v59_v17 = vrot.slane %v49_v10, 1  ;;  %v40_v18 = vsel %vm34_vm0, %v38_v6, %v39_v7  ;;  %v307_v60 = vld [vmem:[#allocation2 + $0x40] sm:$0xff]  ;;  %v308_v62 = vld [vmem:[#allocation2 + $0x48] sm:$0xff]  ;;  %v309_v63 = vld [vmem:[#allocation2 + $0x50] sm:$0xff] }
  0x19   :  { %v50_v19 = vsel %vm34_vm0, %v39_v7, 0.0  ;;  %v81_v22 = vsel %vm78_vm1, %v79_v12, %v80_v13  ;;  %v62_v24 = vrot.slane %v40_v18, 1  ;;  %v61_v28 = vrot.slane %v48_v11, 1  ;;  %v310_v1 = vld [vmem:[#allocation2 + $0x58] sm:$0xff]  ;;  %v311_v2 = vld [vmem:[#allocation2 + $0x60] sm:$0xff]  ;;  %v312_v5 = vld [vmem:[#allocation2 + $0x68] sm:$0xff] }
  0x1a   :  { %v58_v23 = vsel %vm55_vm2, %v56_v14, %v57_v15  ;;  %89 = vrot.lane.b32.xlu1 %v81_v22, %s744_s20  ;;  %v64_v25 = vrot.slane %v50_v19, 1  ;;  %v83_v26 = vsel %vm78_vm1, %v80_v13, %v82_v16  ;;  %v60_v27 = vsel %vm55_vm2, %v57_v15, %v59_v17  ;;  %v548_v4 = vld [vmem:[#allocation2 + $0x10] ss:$0 sm:$0xff]  ;;  %s747_s30 = smov 32   ;;  %s748_s3 = smov 64  }
  0x1b   :  { %66 = vrot.lane.b32.xlu0 %v58_v23, %s745_s0  ;;  %v648_v29 = vpack.c.bf16 %v112_v21, %v111_v20  ;;  %v85_v30 = vrot.slane %v40_v18, 2  ;;  %v63_v32 = vsel %vm55_vm2, %v61_v28, %v62_v24  ;;  %v87_v33 = vrot.slane %v50_v19, 2  ;;  %v313_v6 = vld [vmem:[#allocation2 + $0x70] sm:$0xff]  ;;  %s749_s4 = smov [#allocation5]  }
  0x1c   :  { %v65_v31 = vsel %vm55_vm2, %v62_v24, %v64_v25  ;;  %v84_v34 = vrot.slane %v48_v11, 2  ;;  %vm101_vm6 = vcmask 31744   ;;  %vm106_vm7 = vcmask 64512   ;;  %s536_s5 = sshll.u32 %s749_s4, 4  ;;  %s537_s5 = int_to_ptr.vmem [resolvable:$true] %s536_s5 }
  0x1d   :  { %650 = vmatprep.subr.msk.bf16.mxu0 %vm649_vm5, %v648_v29  ;;  %v88_v35 = vsel %vm78_vm1, %v85_v30, %v87_v33  ;;  %vm118_vm8 = vcmask 97280   ;;  %v654_v56 = vpack.c.bf16 %v303_v54, %v302_v53  ;;  %v658_v58 = vpack.c.bf16 %v305_v57, %v304_v55  ;;  %s716_s6 = scalar_lea.vmem %s537_s5, 512  ;;  %p721_p9 = scmp.lt.s32.totalorder %s537_s5, %s537_s5 }
  0x1e   :  { %91 = vrot.lane.b32.xlu1 %v83_v26, %s744_s20  ;;  %653 = vmatpush3.bf16.msk.msra.mxu0 %vm649_vm5, %v648_v29  ;;  %v86_v36 = vsel %vm78_vm1, %v84_v34, %v85_v30  ;;  %v662_v61 = vpack.c.bf16 %v307_v60, %v306_v59  ;;  %v666_v0 = vpack.c.bf16 %v309_v63, %v308_v62  ;;  %v421_v34 = vld [vmem:[#allocation2 + $0x80] sm:$0xff]  ;;  %vm292_vm9 = vcmask 261120   ;;  %p717_p8 = scmp.ne.s32.totalorder %s537_s5, %s716_s6  ;;  %p722_p10 = scmp.lt.s32.totalorder %s716_s6, %s716_s6 }
  0x1f   :  { %68 = vrot.lane.b32.xlu0 %v60_v27, %s745_s0  ;;  %655 = vmatprep.subr.bf16.mxu1 %v654_v56  ;;  %v670_v3 = vpack.c.bf16 %v311_v2, %v310_v1  ;;  %vm297_vm10 = vcmask 523264   ;;  %vm319_vm11 = vcmask 785408  }
  0x20   :  { %657 = vmatpush3.bf16.msra.mxu1 %v654_v56  ;;  %p723_p11 = por %p722_p10, %p721_p9 }
  0x21   :  { %659 = vmatprep.subr.bf16.mxu1 %v658_v58 }
  0x22   :  { %72 = vrot.lane.b32.xlu1 %v65_v31, %s745_s0  ;;  %p724_p12 = pnand %p723_p11, %p717_p8 }
  0x23   :  { %70 = vrot.lane.b32.xlu0 %v63_v32, %s745_s0 }
  0x24   :  { %661 = vmatpush3.bf16.msra.mxu1 %v658_v58 }
  0x25   :  { %663 = vmatprep.subr.bf16.mxu1 %v662_v61 }
  0x26   :  { %95 = vrot.lane.b32.xlu1 %v88_v35, %s744_s20  ;;  %v422_v35 = vld [vmem:[#allocation2 + $0x88] sm:$0xff] }
  0x27   :  { %93 = vrot.lane.b32.xlu0 %v86_v36, %s744_s20 }
  0x28   :  { %665 = vmatpush3.bf16.msra.mxu1 %v662_v61 }
  0x29   :  { %667 = vmatprep.subr.bf16.mxu1 %v666_v0 }
  0x2c   :  { %669 = vmatpush3.bf16.msra.mxu1 %v666_v0 }
  0x2d   :  { %671 = vmatprep.subr.bf16.mxu1 %v670_v3 }
  0x30   :  { %673 = vmatpush3.bf16.msra.mxu1 %v670_v3 }
  0x8c   :  { %v90_v37 = vpop.permute.xlu1 %89 }
  0x8d   :  { %v67_v38 = vpop.permute.xlu0 %66 }
  0x8e   :  { %v102_v39 = vsel %vm101_vm6, %v47_v9, %v67_v38 }
  0x8f   :  { %v107_v40 = vsel %vm106_vm7, %v102_v39, %v90_v37  ;;  %v678_v37 = vpack.c.bf16 %v422_v35, %v421_v34 }
  0x90   :  { %598 = vmatprep.mubr.msk.f32.mxu0 %vm118_vm8, %v107_v40  ;;  %v92_v41 = vpop.permute.xlu1 %91 }
  0x91   :  { %v69_v42 = vpop.permute.xlu0 %68  ;;  %679 = vmatprep.subr.bf16.mxu0 %v678_v37 }
  0x92   :  { %v103_v43 = vsel %vm101_vm6, %v37_v8, %v69_v42  ;;  %v674_v8 = vpack.c.bf16 %v313_v6, %v312_v5  ;;  %v423_v5 = vld [vmem:[#allocation2 + $0x90] sm:$0xff]  ;;  %v424_v6 = vld [vmem:[#allocation2 + $0x98] sm:$0xff] }
  0x93   :  { %v108_v44 = vsel %vm106_vm7, %v103_v43, %v92_v41 }
  0x94   :  { %599 = vmatmul.mubr.msk.f32.vlgmr.msra.gmra.mrb[0].mxu0 %vm118_vm8, %v108_v44  ;;  %v73_v45 = vpop.permute.xlu1 %72  ;;  %675 = vmatprep.subr.bf16.mxu1 %v674_v8 }
  0x95   :  { %v71_v46 = vpop.permute.xlu0 %70  ;;  %v105_v47 = vsel %vm101_vm6, %v40_v18, %v73_v45  ;;  %677 = vmatpush3.bf16.msra.mxu1 %v674_v8  ;;  %681 = vmatpush3.bf16.msra.mxu0 %v678_v37  ;;  %v554_v8 = vld [vmem:[#allocation2 + $0x78] ss:$0 sm:$0xff] }
  0x96   :  { %v104_v48 = vsel %vm101_vm6, %v48_v11, %v71_v46 }
  0x98   :  { %v96_v49 = vpop.permute.xlu1 %95 }
  0x99   :  { %v94_v50 = vpop.permute.xlu0 %93  ;;  %v110_v51 = vsel %vm106_vm7, %v105_v47, %v96_v49 }
  0x9a   :  { %v109_v52 = vsel %vm106_vm7, %v104_v48, %v94_v50 }
  0x9b   :  { %601 = vmatprep.mubr.msk.f32.mxu0 %vm118_vm8, %v109_v52 }
  0x9c   :  { %602 = vmatmul.mubr.msk.f32.gmra.mrb[2].mxu0 %vm118_vm8, %v110_v51 }
 0x167   :  { %v600_v7 = vpop.f32.mrb[0].mxu0 }
 0x168   :  { %v207_v9 = vadd.f32 %v600_v7, %v548_v4  ;;  %v201_v10 = vpop.f32.mrb[1].mxu0  ;;  %v682_v7 = vpack.c.bf16 %v424_v6, %v423_v5 }
 0x169   :  { %v202_v11 = vadd.f32 %v548_v4, %v201_v10 }
 0x16a   :  { %v221_v12 = vmax.f32 %v207_v9, 0.0  ;;  %683 = vmatprep.subr.bf16.mxu0 %v682_v7 }
 0x16b   :  { %v220_v13 = vmax.f32 %v202_v11, 0.0  ;;  %685 = vmatpush3.bf16.msra.mxu0 %v682_v7 }
 0x16c   :  { %v229_v14 = vrot.slane %v221_v12, 7 }
 0x16d   :  { %v228_v15 = vrot.slane %v220_v13, 7 }
 0x16e   :  { %v242_v16 = vsel %vm34_vm0, %v229_v14, 0.0 }
 0x16f   :  { %v251_v17 = vrot.slane %v242_v16, 1  ;;  %v230_v18 = vsel %vm34_vm0, %v228_v15, %v229_v14  ;;  %v240_v19 = vsel %vm34_vm0, 0.0, %v228_v15  ;;  %v603_v20 = vpop.f32.mrb[2].mxu0  ;;  %v273_v25 = vrot.slane %v242_v16, 2 }
 0x170   :  { %v248_v21 = vrot.slane %v240_v19, 1  ;;  %v217_v22 = vadd.f32 %v603_v20, %v548_v4  ;;  %v211_v23 = vpop.f32.mrb[3].mxu0  ;;  %v249_v24 = vrot.slane %v230_v18, 1  ;;  %v270_v26 = vrot.slane %v240_v19, 2 }
 0x171   :  { %v212_v27 = vadd.f32 %v548_v4, %v211_v23  ;;  %v271_v31 = vrot.slane %v230_v18, 2 }
 0x172   :  { %v223_v28 = vmax.f32 %v217_v22, 0.0  ;;  %v252_v29 = vsel %vm55_vm2, %v249_v24, %v251_v17  ;;  %v250_v30 = vsel %vm55_vm2, %v248_v21, %v249_v24  ;;  %v559_v21 = vld [vmem:[#allocation2 + $0xa0] ss:$0 sm:$0xff] }
 0x173   :  { %v222_v32 = vmax.f32 %v212_v27, 0.0  ;;  %260 = vrot.lane.b32.xlu1 %v252_v29, %s747_s30  ;;  %258 = vrot.lane.b32.xlu0 %v250_v30, %s747_s30  ;;  %v274_v39 = vsel %vm78_vm1, %v271_v31, %v273_v25  ;;  %v272_v40 = vsel %vm78_vm1, %v270_v26, %v271_v31 }
 0x174   :  { %v232_v33 = vrot.slane %v223_v28, 7 }
 0x175   :  { %v231_v36 = vrot.slane %v222_v32, 7 }
 0x176   :  { %v243_v38 = vsel %vm34_vm0, %v232_v33, 0.0 }
 0x177   :  { %v256_v41 = vrot.slane %v243_v38, 1  ;;  %v233_v42 = vsel %vm34_vm0, %v231_v36, %v232_v33  ;;  %v241_v43 = vsel %vm34_vm0, 0.0, %v231_v36  ;;  %282 = vrot.lane.b32.xlu1 %v274_v39, %s748_s3  ;;  %280 = vrot.lane.b32.xlu0 %v272_v40, %s748_s3  ;;  %v278_v46 = vrot.slane %v243_v38, 2 }
 0x178   :  { %v253_v44 = vrot.slane %v241_v43, 1  ;;  %v254_v45 = vrot.slane %v233_v42, 1  ;;  %v275_v47 = vrot.slane %v241_v43, 2  ;;  %v276_v50 = vrot.slane %v233_v42, 2 }
 0x17a   :  { %v257_v48 = vsel %vm55_vm2, %v254_v45, %v256_v41  ;;  %v255_v49 = vsel %vm55_vm2, %v253_v44, %v254_v45  ;;  %v279_v51 = vsel %vm78_vm1, %v276_v50, %v278_v46  ;;  %v277_v52 = vsel %vm78_vm1, %v275_v47, %v276_v50 }
 0x17b   :  { %264 = vrot.lane.b32.xlu1 %v257_v48, %s747_s30  ;;  %262 = vrot.lane.b32.xlu0 %v255_v49, %s747_s30 }
 0x17f   :  { %286 = vrot.lane.b32.xlu1 %v279_v51, %s748_s3  ;;  %284 = vrot.lane.b32.xlu0 %v277_v52, %s748_s3 }
 0x1e5   :  { %v261_v53 = vpop.permute.xlu1 %260  ;;  %v259_v54 = vpop.permute.xlu0 %258 }
 0x1e6   :  { %v294_v55 = vsel %vm292_vm9, %v230_v18, %v261_v53  ;;  %v293_v56 = vsel %vm292_vm9, %v240_v19, %v259_v54 }
 0x1e9   :  { %v283_v57 = vpop.permute.xlu1 %282  ;;  %v281_v58 = vpop.permute.xlu0 %280 }
 0x1ea   :  { %v299_v59 = vsel %vm297_vm10, %v294_v55, %v283_v57  ;;  %v298_v60 = vsel %vm297_vm10, %v293_v56, %v281_v58 }
 0x1eb   :  { %628 = vmatprep.mubr.msk.f32.mxu1 %vm319_vm11, %v298_v60 }
 0x1ec   :  { %629 = vmatmul.mubr.msk.f32.vlgmr.msra.gmra.mrb[0].mxu1 %vm319_vm11, %v299_v59 }
 0x1ed   :  { %v265_v61 = vpop.permute.xlu1 %264  ;;  %v263_v62 = vpop.permute.xlu0 %262 }
 0x1ee   :  { %v296_v63 = vsel %vm292_vm9, %v233_v42, %v265_v61  ;;  %v295_v0 = vsel %vm292_vm9, %v241_v43, %v263_v62 }
 0x1f1   :  { %v287_v1 = vpop.permute.xlu1 %286  ;;  %v285_v2 = vpop.permute.xlu0 %284 }
 0x1f2   :  { %v301_v3 = vsel %vm297_vm10, %v296_v63, %v287_v1  ;;  %v300_v4 = vsel %vm297_vm10, %v295_v0, %v285_v2 }
 0x1f3   :  { %631 = vmatprep.mubr.msk.f32.mxu1 %vm319_vm11, %v300_v4 }
 0x1f4   :  { %632 = vmatmul.mubr.msk.f32.gmra.mrb[2].mxu1 %vm319_vm11, %v301_v3 }
 0x2bf   :  { %v630_v9 = vpop.f32.mrb[0].mxu1 }
 0x2c0   :  { %v404_v10 = vadd.f32 %v630_v9, %v554_v8  ;;  %v398_v11 = vpop.f32.mrb[1].mxu1 }
 0x2c1   :  { %v399_v12 = vadd.f32 %v554_v8, %v398_v11 }
 0x2c2   :  { %v418_v14 = vmax.f32 %v404_v10, 0.0 }
 0x2c3   :  { %v417_v13 = vmax.f32 %v399_v12, 0.0 }
 0x2c5   :  { %642 = vmatprep.mubr.msk.f32.mxu0 %vm292_vm9, %v417_v13 }
 0x2c6   :  { %643 = vmatmul.mubr.msk.f32.vlgmr.msra.gmra.mrb[4].mxu0 %vm292_vm9, %v418_v14 }
 0x2c7   :  { %v633_v15 = vpop.f32.mrb[2].mxu1 }
 0x2c8   :  { %v414_v16 = vadd.f32 %v633_v15, %v554_v8  ;;  %v408_v17 = vpop.f32.mrb[3].mxu1 }
 0x2c9   :  { %v409_v18 = vadd.f32 %v554_v8, %v408_v17 }
 0x2ca   :  { %v420_v20 = vmax.f32 %v414_v16, 0.0 }
 0x2cb   :  { %v419_v19 = vmax.f32 %v409_v18, 0.0 }
 0x2cd   :  { %645 = vmatprep.mubr.msk.f32.mxu0 %vm292_vm9, %v419_v19 }
 0x2ce   :  { %646 = vmatmul.mubr.msk.f32.gmra.mrb[6].mxu0 %vm292_vm9, %v420_v20 }
 0x399   :  { %v644_v22 = vpop.f32.mrb[4].mxu0 }
 0x39a   :  { %v514_v23 = vadd.f32 %v644_v22, %v559_v21  ;;  %v508_v24 = vpop.f32.mrb[5].mxu0 }
 0x39b   :  { %v509_v25 = vadd.f32 %v559_v21, %v508_v24 }
 0x39c   :  { %528 = vst [vmem:[#allocation5 + $0x8] sm:$0xff] %v514_v23 }
 0x39d   :  { %527 = vst [vmem:[#allocation5] sm:$0xff] %v509_v25 }
 0x3a1   :  { %v647_v26 = vpop.f32.mrb[6].mxu0 }
 0x3a2   :  { %v524_v27 = vadd.f32 %v647_v26, %v559_v21  ;;  %v518_v28 = vpop.f32.mrb[7].mxu0 }
 0x3a3   :  { %v519_v29 = vadd.f32 %v559_v21, %v518_v28 }
 0x3a4   :  { %530 = vst [vmem:[#allocation5 + $0x18] sm:$0xff] %v524_v27 }
 0x3a5   :  { %529 = vst [vmem:[#allocation5 + $0x10] sm:$0xff] %v519_v29 }
 0x3a6   :  { %727 = shalt.err (!%p724_p12)
}
 0x3a7   :  { %s728_s9 = scalar_lea.hbm %s870_s2, 512 }
 0x3a8   :  { %p729_p13 = scmp.ne.s32.totalorder %s870_s2, %s728_s9  ;;  %p732_p0 = scmp.lt.u32.totalorder %s728_s9, %s870_s2 }
 0x3aa   :  { %p734_p1 = pnand %p732_p0, %p729_p13 }
 0x3ac   :  { %737 = shalt.err (!%p734_p1)
}
 0x3ad   :  { %542 = dma.vmem_to_hbm [thread:$0]  %s537_s5, 512, %s870_s2, [#allocation4], %s743_s19, %s743_s19, %s744_s20  }
 0x3ae   :  { %740 = dma.done.wait [#allocation4], 512  }
 0x3af   :  { %741 = vsyncadd [#allocation4], 4294966784 }
 0x3b0   :  { %546 = vsyncpa [#allocation3], 1 }
 0x3b1   :  { %547 = vsyncpa [#allocation4], 1 }

</bundles_post_ra>
